<compile_context>
chip_gen: v7x
topology: tpu7x:2x2x1
jax: 0.10.0
libtpu: 0.0.40
codegen_flags: <defaults>
</compile_context>

<pallas_src>
import numpy as np
import jax
import jax.numpy as jnp
from jax.experimental import pallas as pl
from jax.experimental.pallas import tpu as pltpu

F_IN = 3        # input node feature dim
F_HID = 10      # lin1 output dim
TILE_N = 256    # nodes per grid step (lane axis; multiple of 128)
TILE_E = 2048   # edges per grid step (lane axis; multiple of 128)


def _round_up(n, m):
    return ((n + m - 1) // m) * m if n > 0 else m


# ---------------------------------------------------------------------------
# Kernel 1: node MLP (transposed layout, pure VPU)
#   x.T: (3, TILE_N)  ->  x1.T = sigmoid(W1 @ x.T + b1): (10, TILE_N)
#   The K=3 contraction is unrolled as 3 broadcast multiply-adds.
# ---------------------------------------------------------------------------
def node_kernel(xt_ref, w_ref, b_ref, x1t_ref):
    h = b_ref[...]                                             # (F_HID, 1) -> lane bcast
    for k in range(F_IN):
        # (F_HID, 1) * (1, TILE_N) -> (F_HID, TILE_N); lane/sublane broadcasts, VPU only.
        h = h + w_ref[:, k:k + 1] * xt_ref[k:k + 1, :]
    x1t_ref[...] = jax.nn.sigmoid(h)


def node_mlp(xt_pad, w1t, b1t):
    n_pad = xt_pad.shape[1]
    grid = (n_pad // TILE_N,)
    full = lambda i: (0, 0)
    return pl.pallas_call(
        node_kernel,
        out_shape=jax.ShapeDtypeStruct((F_HID, n_pad), jnp.float32),
        grid_spec=pltpu.PrefetchScalarGridSpec(
            num_scalar_prefetch=0,
            grid=grid,
            in_specs=[pl.BlockSpec((F_IN, TILE_N), lambda i: (0, i)),
                      pl.BlockSpec((F_HID, F_IN), full),
                      pl.BlockSpec((F_HID, 1), full)],
            out_specs=pl.BlockSpec((F_HID, TILE_N), lambda i: (0, i))),
        compiler_params=pltpu.CompilerParams(dimension_semantics=("parallel",)),
    )(xt_pad, w1t, b1t)


# ---------------------------------------------------------------------------
# Kernel 2: per-edge squared norm + edge linear (pure VPU + sublane reduce)
#   s = x1[src].T, d = x1[dst].T   : (10, TILE_E)
#   sq  = sum((s-d)^2, axis=0)                       (filter: sq < 0.25)
#   val = sum(s*wa + d*wb, axis=0) + b               (== linx(cat(x1[src], x1[dst])))
#   out row 0 = val, row 1 = sq   -> lane-dense (2, TILE_E) slab
# ---------------------------------------------------------------------------
def edge_kernel(st_ref, dt_ref, wa_ref, wb_ref, b_ref, out_ref):
    s = st_ref[...]                                            # (F_HID, TILE_E)
    d = dt_ref[...]
    diff = s - d
    sq = jnp.sum(diff * diff, axis=0, keepdims=True)           # (1, TILE_E)
    val = jnp.sum(s * wa_ref[...] + d * wb_ref[...], axis=0, keepdims=True) + b_ref[...]
    out_ref[...] = jnp.concatenate([val, sq], axis=0)          # single (2, TILE_E) store


def edge_linear(st_pad, dt_pad, wa, wb, bx):
    e_pad = st_pad.shape[1]
    grid = (e_pad // TILE_E,)
    full = lambda i: (0, 0)
    return pl.pallas_call(
        edge_kernel,
        out_shape=jax.ShapeDtypeStruct((2, e_pad), jnp.float32),
        grid_spec=pltpu.PrefetchScalarGridSpec(
            num_scalar_prefetch=0,
            grid=grid,
            in_specs=[pl.BlockSpec((F_HID, TILE_E), lambda i: (0, i)),
                      pl.BlockSpec((F_HID, TILE_E), lambda i: (0, i)),
                      pl.BlockSpec((F_HID, 1), full),
                      pl.BlockSpec((F_HID, 1), full),
                      pl.BlockSpec((1, 1), full)],
            out_specs=pl.BlockSpec((2, TILE_E), lambda i: (0, i))),
        compiler_params=pltpu.CompilerParams(dimension_semantics=("parallel",)),
    )(st_pad, dt_pad, wa, wb, bx)


# ---------------------------------------------------------------------------
# Forward
# ---------------------------------------------------------------------------
@jax.jit
def _forward_padded(x, edge_index, params):
    """Everything with static shapes stays on device inside one jit."""
    w1, b1, w2, b2, wx, bx = params
    del w2, b2  # x2 = sigmoid(lin2(x)) never affects the module output; not computed.

    n = x.shape[0]
    e = edge_index.shape[1]

    # ---- node stage (Pallas, transposed / lane-dense) ----
    n_pad = _round_up(n, TILE_N)
    xt = jnp.pad(x.T, ((0, 0), (0, n_pad - n)))                 # (3, n_pad)
    x1t_pad = node_mlp(xt, w1.T, b1.T)                          # (10, n_pad)

    # ---- edge gather (XLA glue; padded indices point at node 0, masked out later) ----
    e_pad = _round_up(e, TILE_E)
    src = jnp.pad(edge_index[0], (0, e_pad - e))
    dst = jnp.pad(edge_index[1], (0, e_pad - e))
    st = jnp.take(x1t_pad, src, axis=1)                         # (10, e_pad)
    dt = jnp.take(x1t_pad, dst, axis=1)

    # linx weight [20,1] split into the parts acting on x1[src] and x1[dst].
    wa = wx[:F_HID, :]
    wb = wx[F_HID:, :]

    out2 = edge_linear(st, dt, wa, wb, bx)                      # (2, e_pad)
    val = out2[0]                                               # (e_pad,)
    # ||diff|| < 0.5  <=>  ||diff||^2 < 0.25 ; padded edges removed via arange mask.
    keep = (out2[1] < 0.25) & (jnp.arange(e_pad) < e)
    return val, keep


def forward(x, edge_index, params):
    """Reproduces test.forward. Returns x_out with a dynamic row count."""
    val, keep = _forward_padded(x, edge_index, params)
    # Dynamic-shape epilogue: only a single scalar is synced to host; the gather that
    # builds the compacted output stays on device.
    count = int(jnp.sum(keep))
    idx = jnp.nonzero(keep, size=count)[0]
    return val[idx][:, None]


def reference_forward(x, edge_index, params):
    """Pure-JAX/numpy reference matching PyTorch semantics."""
    w1, b1, w2, b2, wx, bx = params
    x1 = jax.nn.sigmoid(x @ w1 + b1)
    src, dst = edge_index[0], edge_index[1]
    nrm = jnp.linalg.norm(x1[src] - x1[dst], axis=1)
    keep = np.asarray(nrm < 0.5)
    cat = jnp.concatenate([x1[src], x1[dst]], axis=1)
    out = cat @ wx + bx
    return jnp.asarray(np.asarray(out)[keep])


if __name__ == "__main__":
    key = jax.random.PRNGKey(0)
    k_pos, k_t, k_x, k1, k2, k3, k4, k5, k6 = jax.random.split(key, 9)

    # Small graph (module used num_nodes=1000; use 64 for the example).
    num_nodes = 64
    pos = jax.random.uniform(k_pos, (num_nodes, 3), dtype=jnp.float32)
    t = jax.random.uniform(k_t, (num_nodes,), dtype=jnp.float32)
    x = jax.random.uniform(k_x, (num_nodes, 3), dtype=jnp.float32)

    # Build edge_index exactly like the reference script (host glue, numpy).
    pos_np, t_np = np.asarray(pos), np.asarray(t)
    dt = np.abs(t_np[:, None] - t_np[None, :]) < 0.5
    dp = np.linalg.norm(pos_np[:, None, :] - pos_np[None, :, :], axis=-1) < 0.3
    adj = dt & dp & ~np.eye(num_nodes, dtype=bool)
    ii, jj = np.nonzero(adj)
    edge_index = jnp.asarray(np.stack([ii, jj], axis=0).astype(np.int32))

    # Deterministic parameter init (PyTorch Linear-style uniform(-1/sqrt(fan_in), +)).
    def init_linear(kw, kb, fan_in, fan_out):
        bound = 1.0 / np.sqrt(fan_in)
        w = jax.random.uniform(kw, (fan_in, fan_out), jnp.float32, -bound, bound)
        b = jax.random.uniform(kb, (1, fan_out), jnp.float32, -bound, bound)
        return w, b

    w1, b1 = init_linear(k1, k2, 3, 10)    # lin1
    w2, b2 = init_linear(k3, k4, 3, 10)    # lin2 (dead code in forward; kept for interface parity)
    wx, bx = init_linear(k5, k6, 20, 1)    # linx
    # TODO(synk): self.s = Sequential(Linear(3,10), Sigmoid()) is unused in forward; not implemented.
    params = (w1, b1, w2, b2, wx, bx)

    out = forward(x, edge_index, params)
    out = jax.block_until_ready(out)

    ref = reference_forward(x, edge_index, params)
    assert out.shape == ref.shape, (out.shape, ref.shape)
    assert np.allclose(np.asarray(out), np.asarray(ref), atol=1e-5), "mismatch vs reference"

    print("KERNEL_OK")
</pallas_src>

<mosaic_0001>
module attributes {stable_mosaic.version = 11 : i64} {
  func.func @node_kernel(%arg0: i32, %arg1: memref<3x256xf32, #tpu.memory_space<vmem>>, %arg2: memref<10x3xf32, #tpu.memory_space<vmem>>, %arg3: memref<10x1xf32, #tpu.memory_space<vmem>>, %arg4: memref<10x256xf32, #tpu.memory_space<vmem>>) attributes {dimension_semantics = [#tpu.dimension_semantics<parallel>], iteration_bounds = array<i64: 1>, scalar_prefetch = 0 : i64, scratch_operands = 0 : i64, tpu.core_type = #tpu.core_type<tc>, window_params = [{transform_indices = @transform_0, window_bounds = array<i64: 3, 256>}, {pipeline_mode = #tpu.pipeline_mode<synchronous>, transform_indices = @transform_1, window_bounds = array<i64: 10, 3>}, {pipeline_mode = #tpu.pipeline_mode<synchronous>, transform_indices = @transform_2, window_bounds = array<i64: 10, 1>}, {transform_indices = @transform_3, window_bounds = array<i64: 10, 256>}]} {
    %c0 = arith.constant 0 : index
    %c0_0 = arith.constant 0 : index
    %0 = vector.load %arg3[%c0, %c0_0] : memref<10x1xf32, #tpu.memory_space<vmem>>, vector<10x1xf32>
    %c0_1 = arith.constant 0 : index
    %c0_2 = arith.constant 0 : index
    %1 = vector.load %arg2[%c0_1, %c0_2] : memref<10x3xf32, #tpu.memory_space<vmem>>, vector<10x1xf32>
    %c0_3 = arith.constant 0 : index
    %c0_4 = arith.constant 0 : index
    %2 = vector.load %arg1[%c0_3, %c0_4] : memref<3x256xf32, #tpu.memory_space<vmem>>, vector<1x256xf32>
    %3 = vector.broadcast %1 : vector<10x1xf32> to vector<10x256xf32>
    %4 = vector.broadcast %2 : vector<1x256xf32> to vector<10x256xf32>
    %5 = arith.mulf %3, %4 : vector<10x256xf32>
    %6 = vector.broadcast %0 : vector<10x1xf32> to vector<10x256xf32>
    %7 = arith.addf %6, %5 : vector<10x256xf32>
    %c0_5 = arith.constant 0 : index
    %c1 = arith.constant 1 : index
    %8 = vector.load %arg2[%c0_5, %c1] : memref<10x3xf32, #tpu.memory_space<vmem>>, vector<10x1xf32>
    %c1_6 = arith.constant 1 : index
    %c0_7 = arith.constant 0 : index
    %9 = vector.load %arg1[%c1_6, %c0_7] : memref<3x256xf32, #tpu.memory_space<vmem>>, vector<1x256xf32>
    %10 = vector.broadcast %8 : vector<10x1xf32> to vector<10x256xf32>
    %11 = vector.broadcast %9 : vector<1x256xf32> to vector<10x256xf32>
    %12 = arith.mulf %10, %11 : vector<10x256xf32>
    %13 = arith.addf %7, %12 : vector<10x256xf32>
    %c0_8 = arith.constant 0 : index
    %c2 = arith.constant 2 : index
    %14 = vector.load %arg2[%c0_8, %c2] : memref<10x3xf32, #tpu.memory_space<vmem>>, vector<10x1xf32>
    %c2_9 = arith.constant 2 : index
    %c0_10 = arith.constant 0 : index
    %15 = vector.load %arg1[%c2_9, %c0_10] : memref<3x256xf32, #tpu.memory_space<vmem>>, vector<1x256xf32>
    %16 = vector.broadcast %14 : vector<10x1xf32> to vector<10x256xf32>
    %17 = vector.broadcast %15 : vector<1x256xf32> to vector<10x256xf32>
    %18 = arith.mulf %16, %17 : vector<10x256xf32>
    %19 = arith.addf %13, %18 : vector<10x256xf32>
    %20 = arith.negf %19 : vector<10x256xf32>
    %21 = math.exp %20 : vector<10x256xf32>
    %cst = arith.constant 1.000000e+00 : f32
    %22 = vector.broadcast %cst : f32 to vector<10x256xf32>
    %23 = arith.addf %22, %21 : vector<10x256xf32>
    %24 = arith.divf %22, %23 : vector<10x256xf32>
    %c0_11 = arith.constant 0 : index
    %c0_12 = arith.constant 0 : index
    %25 = vector.load %arg4[%c0_11, %c0_12] : memref<10x256xf32, #tpu.memory_space<vmem>>, vector<10x256xf32>
    tpu.vector_store %arg4[%c0_11, %c0_12], %24 {strides = array<i32>} : memref<10x256xf32, #tpu.memory_space<vmem>>, vector<10x256xf32>,
    return
  }
  func.func @transform_0(%arg0: i32) -> (i32, i32) {
    %c0_i32 = arith.constant 0 : i32
    %c0_i32_0 = arith.constant 0 : i32
    return %c0_i32, %arg0 : i32, i32
  }
  func.func @transform_1(%arg0: i32) -> (i32, i32) {
    %c0_i32 = arith.constant 0 : i32
    %c0_i32_0 = arith.constant 0 : i32
    %c0_i32_1 = arith.constant 0 : i32
    return %c0_i32, %c0_i32_0 : i32, i32
  }
  func.func @transform_2(%arg0: i32) -> (i32, i32) {
    %c0_i32 = arith.constant 0 : i32
    %c0_i32_0 = arith.constant 0 : i32
    %c0_i32_1 = arith.constant 0 : i32
    return %c0_i32, %c0_i32_0 : i32, i32
  }
  func.func @transform_3(%arg0: i32) -> (i32, i32) {
    %c0_i32 = arith.constant 0 : i32
    %c0_i32_0 = arith.constant 0 : i32
    return %c0_i32, %arg0 : i32, i32
  }
}

module attributes {stable_mosaic.version = 11 : i64} {
  func.func @edge_kernel(%arg0: i32, %arg1: memref<10x2048xf32, #tpu.memory_space<vmem>>, %arg2: memref<10x2048xf32, #tpu.memory_space<vmem>>, %arg3: memref<10x1xf32, #tpu.memory_space<vmem>>, %arg4: memref<10x1xf32, #tpu.memory_space<vmem>>, %arg5: memref<1x1xf32, #tpu.memory_space<vmem>>, %arg6: memref<2x2048xf32, #tpu.memory_space<vmem>>) attributes {dimension_semantics = [#tpu.dimension_semantics<parallel>], iteration_bounds = array<i64: 1>, scalar_prefetch = 0 : i64, scratch_operands = 0 : i64, tpu.core_type = #tpu.core_type<tc>, window_params = [{transform_indices = @transform_0, window_bounds = array<i64: 10, 2048>}, {transform_indices = @transform_1, window_bounds = array<i64: 10, 2048>}, {pipeline_mode = #tpu.pipeline_mode<synchronous>, transform_indices = @transform_2, window_bounds = array<i64: 10, 1>}, {pipeline_mode = #tpu.pipeline_mode<synchronous>, transform_indices = @transform_3, window_bounds = array<i64: 10, 1>}, {pipeline_mode = #tpu.pipeline_mode<synchronous>, transform_indices = @transform_4, window_bounds = array<i64: 1, 1>}, {transform_indices = @transform_5, window_bounds = array<i64: 2, 2048>}]} {
    %c0 = arith.constant 0 : index
    %c0_0 = arith.constant 0 : index
    %0 = vector.load %arg1[%c0, %c0_0] : memref<10x2048xf32, #tpu.memory_space<vmem>>, vector<10x2048xf32>
    %c0_1 = arith.constant 0 : index
    %c0_2 = arith.constant 0 : index
    %1 = vector.load %arg2[%c0_1, %c0_2] : memref<10x2048xf32, #tpu.memory_space<vmem>>, vector<10x2048xf32>
    %2 = arith.subf %0, %1 : vector<10x2048xf32>
    %3 = arith.mulf %2, %2 : vector<10x2048xf32>
    %cst = arith.constant dense<0.000000e+00> : vector<2048xf32>
    %4 = vector.multi_reduction <add>, %3, %cst [0] : vector<10x2048xf32> to vector<2048xf32>
    %5 = vector.shape_cast %4 : vector<2048xf32> to vector<1x2048xf32>
    %c0_3 = arith.constant 0 : index
    %c0_4 = arith.constant 0 : index
    %6 = vector.load %arg3[%c0_3, %c0_4] : memref<10x1xf32, #tpu.memory_space<vmem>>, vector<10x1xf32>
    %7 = vector.broadcast %6 : vector<10x1xf32> to vector<10x2048xf32>
    %8 = arith.mulf %0, %7 : vector<10x2048xf32>
    %c0_5 = arith.constant 0 : index
    %c0_6 = arith.constant 0 : index
    %9 = vector.load %arg4[%c0_5, %c0_6] : memref<10x1xf32, #tpu.memory_space<vmem>>, vector<10x1xf32>
    %10 = vector.broadcast %9 : vector<10x1xf32> to vector<10x2048xf32>
    %11 = arith.mulf %1, %10 : vector<10x2048xf32>
    %12 = arith.addf %8, %11 : vector<10x2048xf32>
    %cst_7 = arith.constant dense<0.000000e+00> : vector<2048xf32>
    %13 = vector.multi_reduction <add>, %12, %cst_7 [0] : vector<10x2048xf32> to vector<2048xf32>
    %14 = vector.shape_cast %13 : vector<2048xf32> to vector<1x2048xf32>
    %c0_8 = arith.constant 0 : index
    %c0_9 = arith.constant 0 : index
    %15 = vector.load %arg5[%c0_8, %c0_9] : memref<1x1xf32, #tpu.memory_space<vmem>>, vector<1x1xf32>
    %16 = vector.broadcast %15 : vector<1x1xf32> to vector<1x2048xf32>
    %17 = arith.addf %14, %16 : vector<1x2048xf32>
    %18 = tpu.concatenate %17, %5 in 0 : vector<1x2048xf32>, vector<1x2048xf32> -> vector<2x2048xf32>
    %c0_10 = arith.constant 0 : index
    %c0_11 = arith.constant 0 : index
    %19 = vector.load %arg6[%c0_10, %c0_11] : memref<2x2048xf32, #tpu.memory_space<vmem>>, vector<2x2048xf32>
    tpu.vector_store %arg6[%c0_10, %c0_11], %18 {strides = array<i32>} : memref<2x2048xf32, #tpu.memory_space<vmem>>, vector<2x2048xf32>,
    return
  }
  func.func @transform_0(%arg0: i32) -> (i32, i32) {
    %c0_i32 = arith.constant 0 : i32
    %c0_i32_0 = arith.constant 0 : i32
    return %c0_i32, %arg0 : i32, i32
  }
  func.func @transform_1(%arg0: i32) -> (i32, i32) {
    %c0_i32 = arith.constant 0 : i32
    %c0_i32_0 = arith.constant 0 : i32
    return %c0_i32, %arg0 : i32, i32
  }
  func.func @transform_2(%arg0: i32) -> (i32, i32) {
    %c0_i32 = arith.constant 0 : i32
    %c0_i32_0 = arith.constant 0 : i32
    %c0_i32_1 = arith.constant 0 : i32
    return %c0_i32, %c0_i32_0 : i32, i32
  }
  func.func @transform_3(%arg0: i32) -> (i32, i32) {
    %c0_i32 = arith.constant 0 : i32
    %c0_i32_0 = arith.constant 0 : i32
    %c0_i32_1 = arith.constant 0 : i32
    return %c0_i32, %c0_i32_0 : i32, i32
  }
  func.func @transform_4(%arg0: i32) -> (i32, i32) {
    %c0_i32 = arith.constant 0 : i32
    %c0_i32_0 = arith.constant 0 : i32
    %c0_i32_1 = arith.constant 0 : i32
    return %c0_i32, %c0_i32_0 : i32, i32
  }
  func.func @transform_5(%arg0: i32) -> (i32, i32) {
    %c0_i32 = arith.constant 0 : i32
    %c0_i32_0 = arith.constant 0 : i32
    return %c0_i32, %arg0 : i32, i32
  }
}

</mosaic_0001>

<bundles_post_ra>
// kernel: _forward_padded.2
= control target key start
LH: loop header
LB: loop body
LE: loop exit
PB: predicated region body
PF: predicated region fallthrough
CT: control target
= control target key end

     0   :  { %v179_v0 = vmov 0   ;;  %v180_v5 = vmov 1   ;;  %v181_v6 = vmov 2   ;;  %v30_v7 = vlaneseq  ;;  %s235_s2 = inlined_call_operand.vmem [shape: f32[10,1], index: 2, kind: input, shape index: {}]   ;;  %s236_s1 = inlined_call_operand.vmem [shape: f32[10,3], index: 1, kind: input, shape index: {}]   ;;  %s237_s0 = inlined_call_operand.vmem [shape: f32[3,256], index: 0, kind: input, shape index: {}]   ;;  %s238_s3 = inlined_call_operand.vmem [shape: f32[10,256], index: 3, kind: output, shape index: {}]  }
   0x1   :  { %158 = vset.pattern.permute.xlu1 %v179_v0  ;;  %157 = vset.pattern.permute.xlu0 %v179_v0  ;;  %v14_v1 = vld [vmem:[%s235_s2] sm:$0xff]  ;;  %v15_v3 = vld [vmem:[%s235_s2 + $0x8] sm:$0x3] }
   0x2   :  { %v16_v2 = vld [vmem:[%s236_s1] sm:$0xff]  ;;  %46 = vperm.xlu1 %158, %v14_v1   ;;  %v17_v4 = vld [vmem:[%s236_s1 + $0x8] sm:$0x3]  ;;  %v31_v8 = vshrl.u32 %v30_v7, 7 }
   0x3   :  { %21 = vperm.xlu0 %157, %v16_v2   ;;  %v18_v13 = vld [vmem:[%s237_s0] ss:$4 sm:$0x3]  ;;  %v148_v14 = vld [vmem:[%s237_s0 + $0x1] ss:$4 sm:$0x3] }
   0x4   :  { %v32_v10 = vsub.s32 0, %v31_v8  ;;  %v36_v11 = vsub.s32 1, %v31_v8  ;;  %v149_v25 = vld [vmem:[%s237_s0 + $0x2] ss:$4 sm:$0x3] }
   0x6   :  { %51 = vperm.xlu1 %158, %v15_v3   ;;  %v33_v15 = vrot.slane %v18_v13, %v32_v10  ;;  %v37_v16 = vrot.slane %v18_v13, %v36_v11  ;;  %v72_v19 = vrot.slane %v148_v14, %v32_v10  ;;  %v76_v20 = vrot.slane %v148_v14, %v36_v11 }
   0x7   :  { %26 = vperm.xlu0 %157, %v17_v4   ;;  %v101_v32 = vrot.slane %v149_v25, %v32_v10  ;;  %v105_v33 = vrot.slane %v149_v25, %v36_v11 }
   0xa   :  { %160 = vset.pattern.permute.xlu1 %v180_v5 }
   0xb   :  { %159 = vset.pattern.permute.xlu0 %v180_v5  ;;  %65 = vperm.xlu1 %160, %v17_v4  }
   0xc   :  { %61 = vperm.xlu0 %159, %v16_v2  }
   0xf   :  { %161 = vset.pattern.permute.xlu1 %v181_v6 }
  0x10   :  { %162 = vset.pattern.permute.xlu0 %v181_v6  ;;  %90 = vperm.xlu1 %161, %v16_v2  }
  0x11   :  { %94 = vperm.xlu0 %162, %v17_v4  }
  0x81   :  { %v47_v9 = vpop.permute.xlu1 %46 }
  0x82   :  { %v22_v12 = vpop.permute.xlu0 %21 }
  0x83   :  { %v40_v21 = vmul.f32 %v33_v15, %v22_v12  ;;  %v41_v22 = vmul.f32 %v37_v16, %v22_v12 }
  0x85   :  { %v52_v17 = vpop.permute.xlu1 %51  ;;  %v54_v34 = vadd.f32 %v47_v9, %v40_v21  ;;  %v55_v35 = vadd.f32 %v47_v9, %v41_v22 }
  0x86   :  { %v27_v18 = vpop.permute.xlu0 %26 }
  0x87   :  { %v42_v23 = vmul.f32 %v33_v15, %v27_v18  ;;  %v43_v24 = vmul.f32 %v37_v16, %v27_v18 }
  0x89   :  { %v56_v36 = vadd.f32 %v52_v17, %v42_v23  ;;  %v57_v37 = vadd.f32 %v52_v17, %v43_v24 }
  0x8a   :  { %v66_v26 = vpop.permute.xlu1 %65 }
  0x8b   :  { %v62_v27 = vpop.permute.xlu0 %61  ;;  %v81_v28 = vmul.f32 %v72_v19, %v66_v26  ;;  %v82_v29 = vmul.f32 %v76_v20, %v66_v26 }
  0x8c   :  { %v79_v30 = vmul.f32 %v72_v19, %v62_v27  ;;  %v80_v31 = vmul.f32 %v76_v20, %v62_v27 }
  0x8d   :  { %v85_v38 = vadd.f32 %v81_v28, %v56_v36  ;;  %v86_v39 = vadd.f32 %v82_v29, %v57_v37 }
  0x8e   :  { %v83_v40 = vadd.f32 %v79_v30, %v54_v34  ;;  %v84_v41 = vadd.f32 %v80_v31, %v55_v35 }
  0x8f   :  { %v91_v42 = vpop.permute.xlu1 %90 }
  0x90   :  { %v95_v43 = vpop.permute.xlu0 %94  ;;  %v108_v44 = vmul.f32 %v101_v32, %v91_v42  ;;  %v109_v45 = vmul.f32 %v105_v33, %v91_v42 }
  0x91   :  { %v110_v46 = vmul.f32 %v101_v32, %v95_v43  ;;  %v111_v47 = vmul.f32 %v105_v33, %v95_v43 }
  0x92   :  { %v112_v48 = vadd.f32 %v108_v44, %v83_v40  ;;  %v113_v49 = vadd.f32 %v109_v45, %v84_v41 }
  0x93   :  { %v114_v50 = vadd.f32 %v110_v46, %v85_v38  ;;  %v115_v51 = vadd.f32 %v111_v47, %v86_v39 }
  0x94   :  { %v150_v52 = vmul.f32 -1.442695, %v112_v48  ;;  %v151_v53 = vmul.f32 -1.442695, %v113_v49 }
  0x95   :  { %v152_v54 = vmul.f32 -1.442695, %v114_v50  ;;  %v153_v55 = vmul.f32 -1.442695, %v115_v51 }
  0x96   :  { %163 = vpow2.f32 %v150_v52 }
  0x97   :  { %165 = vpow2.f32 %v151_v53 }
  0x98   :  { %167 = vpow2.f32 %v152_v54 }
  0x99   :  { %169 = vpow2.f32 %v153_v55 }
  0xa0   :  { %v164_v56 = vpop.eup %163 }
  0xa1   :  { %v166_v57 = vpop.eup %165  ;;  %v128_v58 = vadd.f32 1.0, %v164_v56 }
  0xa2   :  { %v168_v59 = vpop.eup %167  ;;  %v129_v60 = vadd.f32 1.0, %v166_v57 }
  0xa3   :  { %v170_v61 = vpop.eup %169  ;;  %171 = vrcp.f32 %v128_v58  ;;  %v130_v62 = vadd.f32 1.0, %v168_v59 }
  0xa4   :  { %173 = vrcp.f32 %v129_v60  ;;  %v131_v63 = vadd.f32 1.0, %v170_v61 }
  0xa5   :  { %175 = vrcp.f32 %v130_v62 }
  0xa6   :  { %177 = vrcp.f32 %v131_v63 }
  0xad   :  { %v172_v0 = vpop.eup %171 }
  0xae   :  { %v174_v1 = vpop.eup %173  ;;  %140 = vst [vmem:[%s238_s3] sm:$0xff] %v172_v0 }
  0xaf   :  { %v176_v2 = vpop.eup %175  ;;  %141 = vst [vmem:[%s238_s3 + $0x8] sm:$0xff] %v174_v1 }
  0xb0   :  { %v178_v3 = vpop.eup %177  ;;  %142 = vst [vmem:[%s238_s3 + $0x10] sm:$0x3] %v176_v2 }
  0xb1   :  { %143 = vst [vmem:[%s238_s3 + $0x18] sm:$0x3] %v178_v3 }

// kernel: _forward_padded.3
= control target key start
LH: loop header
LB: loop body
LE: loop exit
PB: predicated region body
PF: predicated region fallthrough
CT: control target
= control target key end

     0   :  { %v670_v0 = vmov 0   ;;  %v533_v7 = vlaneseq  ;;  %v671_v8 = vmov 1983009808   ;;  %vm150_vm0 = vcmask 1041408   ;;  %s1481_s2 = inlined_call_operand.vmem [shape: f32[10,1], index: 2, kind: input, shape index: {}]   ;;  %s1482_s3 = inlined_call_operand.vmem [shape: f32[10,1], index: 3, kind: input, shape index: {}]   ;;  %s1483_s4 = inlined_call_operand.<no memory space> [shape: f32[1,1], index: 4, kind: input, shape index: {}]   ;;  %s1484_s0 = inlined_call_operand.vmem [shape: f32[10,2048], index: 0, kind: input, shape index: {}]   ;;  %s1485_s1 = inlined_call_operand.vmem [shape: f32[10,2048], index: 1, kind: input, shape index: {}]   ;;  %s1486_s5 = inlined_call_operand.vmem [shape: f32[2,2048], index: 5, kind: output, shape index: {}]  }
   0x1   :  { %669 = vset.pattern.permute.xlu1 %v670_v0  ;;  %668 = vset.pattern.permute.xlu0 %v670_v0  ;;  %v280_v1 = vld [vmem:[%s1481_s2 + $0x8] sm:$0x3]  ;;  %v279_v2 = vld [vmem:[%s1481_s2] sm:$0xff]  ;;  %v10_v3 = vstv %s1483_s4  ;;  %v589_v9 = vunpack.c.l.s4 %v671_v8  ;;  %v739_v16 = vld [vmem:[%s1484_s0 + $0x10] sm:$0xff]  ;;  %vm553_vm1 = vcmask 1040384  }
   0x2   :  { %288 = vperm.xlu0 %668, %v280_v1   ;;  %283 = vperm.xlu1 %669, %v279_v2   ;;  %11 = vst [vmem:[#allocation2] sm:$0x1] %v10_v3  ;;  %v324_v4 = vld [vmem:[%s1482_s3 + $0x8] sm:$0x3]  ;;  %v323_v5 = vld [vmem:[%s1482_s3] sm:$0xff]  ;;  %v727_v12 = vshrl.u32 %v533_v7, 7 }
   0x3   :  { %v720_v10 = vld [vmem:[%s1484_s0] sm:$0xff]  ;;  %v590_v13 = vunpack.c.0.s8 %v589_v9  ;;  %v732_v14 = vld [vmem:[%s1484_s0 + $0x8] sm:$0xff]  ;;  %v744_v17 = vld [vmem:[%s1484_s0 + $0x18] sm:$0xff] }
   0x4   :  { %v725_v11 = vld [vmem:[%s1485_s1] sm:$0xff]  ;;  %1541 = vst [vmem:[#allocation4_spill] sm:$0xff] %v727_v12  ;;  %v749_v18 = vld [vmem:[%s1485_s1 + $0x8] sm:$0xff]  ;;  %v764_v21 = vld [vmem:[%s1484_s0 + $0x30] sm:$0xff] }
   0x5   :  { %1540 = vst [vmem:[#allocation3_spill] sm:$0xff] %v725_v11  ;;  %v86_v15 = vsub.f32 %v720_v10, %v725_v11  ;;  %1542 = vst [vmem:[#allocation5_spill] sm:$0xff] %v749_v18  ;;  %v754_v19 = vld [vmem:[%s1484_s0 + $0x20] sm:$0xff]  ;;  %v759_v20 = vld [vmem:[%s1484_s0 + $0x28] sm:$0xff]  ;;  %v87_v24 = vsub.f32 %v732_v14, %v749_v18  ;;  %v807_v32 = vsub.s32 %v590_v13, %v727_v12 }
   0x6   :  { %332 = vperm.xlu0 %668, %v324_v4   ;;  %327 = vperm.xlu1 %669, %v323_v5   ;;  %v769_v22 = vld [vmem:[%s1484_s0 + $0x38] sm:$0xff]  ;;  %v774_v23 = vld [vmem:[%s1485_s1 + $0x10] sm:$0xff]  ;;  %v781_v25 = vld [vmem:[%s1484_s0 + $0x40] sm:$0xff] }
   0x7   :  { %1543 = vst [vmem:[#allocation6_spill] sm:$0xff] %v774_v23  ;;  %v786_v26 = vld [vmem:[%s1484_s0 + $0x48] sm:$0xff]  ;;  %v791_v27 = vld [vmem:[%s1484_s0 + $0x50] sm:$0xff]  ;;  %v796_v28 = vld [vmem:[%s1485_s1 + $0x18] sm:$0xff]  ;;  %v88_v30 = vsub.f32 %v739_v16, %v774_v23  ;;  %v841_v40 = vmul.f32 %v86_v15, %v86_v15  ;;  %v923_v60 = vmul.f32 %v87_v24, %v87_v24 }
   0x8   :  { %1544 = vst [vmem:[#allocation7_spill] sm:$0xff] %v796_v28  ;;  %v801_v29 = vld [vmem:[%s1485_s1 + $0x20] sm:$0xff]  ;;  %1546 = vst [vmem:[#allocation9_spill] sm:$0xff] %v807_v32  ;;  %v812_v33 = vld [vmem:[%s1484_s0 + $0x58] sm:$0xff]  ;;  %v89_v39 = vsub.f32 %v744_v17, %v796_v28 }
   0x9   :  { %v527_v6 = vld [vmem:[#allocation2] sm:$0x1]  ;;  %1545 = vst [vmem:[#allocation8_spill] sm:$0xff] %v801_v29  ;;  %v822_v35 = vld [vmem:[%s1484_s0 + $0x68] sm:$0xff]  ;;  %v832_v37 = vld [vmem:[%s1485_s1 + $0x30] sm:$0xff]  ;;  %v90_v47 = vsub.f32 %v754_v19, %v801_v29 }
   0xa   :  { %530 = vperm.xlu0 %668, %v527_v6   ;;  %v817_v34 = vld [vmem:[%s1484_s0 + $0x60] sm:$0xff]  ;;  %1547 = vst [vmem:[#allocation10_spill] sm:$0xff] %v822_v35  ;;  %v827_v36 = vld [vmem:[%s1485_s1 + $0x28] sm:$0xff]  ;;  %1549 = vst [vmem:[#allocation12_spill] sm:$0xff] %v832_v37  ;;  %v92_v49 = vsub.f32 %v764_v21, %v832_v37  ;;  %v961_v6 = vmul.f32 %v88_v30, %v88_v30  ;;  %v999_v12 = vmul.f32 %v89_v39, %v89_v39 }
   0xb   :  { %1548 = vst [vmem:[#allocation11_spill] sm:$0xff] %v827_v36  ;;  %v837_v38 = vld [vmem:[%s1485_s1 + $0x38] sm:$0xff]  ;;  %v846_v41 = vld [vmem:[%s1484_s0 + $0x70] sm:$0xff]  ;;  %v856_v43 = vld [vmem:[%s1484_s0 + $0x80] sm:$0x3]  ;;  %v91_v48 = vsub.f32 %v759_v20, %v827_v36 }
   0xc   :  { %1550 = vst [vmem:[#allocation13_spill] sm:$0xff] %v837_v38  ;;  %1551 = vst [vmem:[#allocation14_spill] sm:$0xff] %v846_v41  ;;  %v851_v42 = vld [vmem:[%s1484_s0 + $0x78] sm:$0xff]  ;;  %v861_v44 = vld [vmem:[%s1485_s1 + $0x40] sm:$0xff]  ;;  %v881_v50 = vsub.f32 %v769_v22, %v837_v38  ;;  %v124_v18 = vmul.f32 %v92_v49, %v92_v49 }
   0xd   :  { %1552 = vst [vmem:[#allocation15_spill] sm:$0xff] %v851_v42  ;;  %1553 = vst [vmem:[#allocation16_spill] sm:$0xff] %v856_v43  ;;  %v866_v45 = vld [vmem:[%s1485_s1 + $0x48] sm:$0xff]  ;;  %v871_v46 = vld [vmem:[%s1485_s1 + $0x50] sm:$0xff]  ;;  %v94_v57 = vsub.f32 %v781_v25, %v861_v44  ;;  %v1065_v29 = vmul.f32 %v91_v48, %v91_v48 }
   0xe   :  { %1554 = vst [vmem:[#allocation17_spill] sm:$0xff] %v861_v44  ;;  %1555 = vst [vmem:[#allocation18_spill] sm:$0xff] %v866_v45  ;;  %v886_v51 = vld [vmem:[%s1484_s0 + $0x88] sm:$0x3]  ;;  %v891_v52 = vld [vmem:[%s1484_s0 + $0x90] sm:$0x3]  ;;  %v917_v58 = vsub.f32 %v786_v26, %v866_v45  ;;  %v921_v59 = vsub.f32 %v791_v27, %v871_v46  ;;  %v1037_v44 = vmul.f32 %v90_v47, %v90_v47 }
   0xf   :  { %1556 = vst [vmem:[#allocation19_spill] sm:$0xff] %v871_v46  ;;  %1557 = vst [vmem:[#allocation20_spill] sm:$0xff] %v886_v51  ;;  %v896_v53 = vld [vmem:[%s1484_s0 + $0x98] sm:$0x3]  ;;  %v906_v55 = vld [vmem:[%s1485_s1 + $0x60] sm:$0xff] }
  0x10   :  { %1558 = vst [vmem:[#allocation21_spill] sm:$0xff] %v891_v52  ;;  %1559 = vst [vmem:[#allocation22_spill] sm:$0xff] %v896_v53  ;;  %v901_v54 = vld [vmem:[%s1485_s1 + $0x58] sm:$0xff]  ;;  %v911_v56 = vld [vmem:[%s1485_s1 + $0x68] sm:$0xff]  ;;  %v98_v4 = vsub.f32 %v817_v34, %v906_v55 }
  0x11   :  { %1560 = vst [vmem:[#allocation23_spill] sm:$0xff] %v901_v54  ;;  %1561 = vst [vmem:[#allocation24_spill] sm:$0xff] %v906_v55  ;;  %v928_v61 = vld [vmem:[%s1484_s0 + $0xa0] sm:$0x3]  ;;  %v933_v62 = vld [vmem:[%s1484_s0 + $0xa8] sm:$0x3]  ;;  %v97_v3 = vsub.f32 %v812_v33, %v901_v54  ;;  %v99_v5 = vsub.f32 %v822_v35, %v911_v56 }
  0x12   :  { %1562 = vst [vmem:[#allocation25_spill] sm:$0xff] %v911_v56  ;;  %1563 = vst [vmem:[#allocation26_spill] sm:$0xff] %v928_v61  ;;  %v938_v63 = vld [vmem:[%s1484_s0 + $0xb0] sm:$0x3]  ;;  %v948_v1 = vld [vmem:[%s1485_s1 + $0x78] sm:$0xff] }
  0x13   :  { %1564 = vst [vmem:[#allocation27_spill] sm:$0xff] %v933_v62  ;;  %1565 = vst [vmem:[#allocation28_spill] sm:$0xff] %v938_v63  ;;  %v943_v0 = vld [vmem:[%s1485_s1 + $0x70] sm:$0xff]  ;;  %v953_v2 = vld [vmem:[%s1485_s1 + $0x80] sm:$0x3]  ;;  %v101_v31 = vsub.f32 %v851_v42, %v948_v1 }
  0x14   :  { %1566 = vst [vmem:[#allocation29_spill] sm:$0xff] %v943_v0  ;;  %1567 = vst [vmem:[#allocation30_spill] sm:$0xff] %v948_v1  ;;  %v966_v7 = vld [vmem:[%s1484_s0 + $0xb8] sm:$0x3]  ;;  %v971_v8 = vld [vmem:[%s1484_s0 + $0xc0] sm:$0x3]  ;;  %v100_v30 = vsub.f32 %v846_v41, %v943_v0  ;;  %v102_v32 = vsub.f32 %v856_v43, %v953_v2 }
  0x15   :  { %1568 = vst [vmem:[#allocation31_spill] sm:$0xff] %v953_v2  ;;  %1569 = vst [vmem:[#allocation32_spill] sm:$0xff] %v966_v7  ;;  %v976_v9 = vld [vmem:[%s1484_s0 + $0xc8] sm:$0x3]  ;;  %v986_v15 = vld [vmem:[%s1485_s1 + $0x90] sm:$0x3]  ;;  %v133_v43 = vmul.f32 %v101_v31, %v101_v31 }
  0x16   :  { %1570 = vst [vmem:[#allocation33_spill] sm:$0xff] %v971_v8  ;;  %1571 = vst [vmem:[#allocation34_spill] sm:$0xff] %v976_v9  ;;  %v981_v13 = vld [vmem:[%s1485_s1 + $0x88] sm:$0x3]  ;;  %v991_v24 = vld [vmem:[%s1485_s1 + $0x98] sm:$0x3]  ;;  %v104_v46 = vsub.f32 %v891_v52, %v986_v15  ;;  %v129_v52 = vmul.f32 %v97_v3, %v97_v3 }
  0x17   :  { %1572 = vst [vmem:[#allocation35_spill] sm:$0xff] %v981_v13  ;;  %1573 = vst [vmem:[#allocation36_spill] sm:$0xff] %v986_v15  ;;  %v1004_v56 = vld [vmem:[%s1484_s0 + $0xd0] sm:$0x3]  ;;  %v1009_v55 = vld [vmem:[%s1484_s0 + $0xd8] sm:$0x3]  ;;  %v103_v54 = vsub.f32 %v886_v51, %v981_v13  ;;  %v105_v45 = vsub.f32 %v896_v53, %v991_v24  ;;  %v128_v53 = vmul.f32 %v921_v59, %v921_v59 }
  0x18   :  { %1574 = vst [vmem:[#allocation37_spill] sm:$0xff] %v991_v24  ;;  %1575 = vst [vmem:[#allocation38_spill] sm:$0xff] %v1004_v56  ;;  %v1014_v0 = vld [vmem:[%s1484_s0 + $0xe0] sm:$0x3]  ;;  %v1024_v2 = vld [vmem:[%s1485_s1 + $0xa8] sm:$0x3]  ;;  %v130_v51 = vmul.f32 %v98_v4, %v98_v4 }
  0x19   :  { %1576 = vst [vmem:[#allocation39_spill] sm:$0xff] %v1009_v55  ;;  %1577 = vst [vmem:[#allocation40_spill] sm:$0xff] %v1014_v0  ;;  %v1019_v39 = vld [vmem:[%s1485_s1 + $0xa0] sm:$0x3]  ;;  %v1029_v1 = vld [vmem:[%s1485_s1 + $0xb0] sm:$0x3]  ;;  %v107_v15 = vsub.f32 %v933_v62, %v1024_v2  ;;  %v137_v62 = vmul.f32 %v105_v45, %v105_v45 }
  0x1a   :  { %1578 = vst [vmem:[#allocation41_spill] sm:$0xff] %v1019_v39  ;;  %1579 = vst [vmem:[#allocation42_spill] sm:$0xff] %v1024_v2  ;;  %v1042_v38 = vld [vmem:[%s1484_s0 + $0xe8] sm:$0x3]  ;;  %v1047_v37 = vld [vmem:[%s1485_s1 + $0xb8] sm:$0x3]  ;;  %v106_v24 = vsub.f32 %v928_v61, %v1019_v39  ;;  %v108_v36 = vsub.f32 %v938_v63, %v1029_v1  ;;  %v127_v61 = vmul.f32 %v917_v58, %v917_v58 }
  0x1b   :  { %1580 = vst [vmem:[#allocation43_spill] sm:$0xff] %v1029_v1  ;;  %1581 = vst [vmem:[#allocation44_spill] sm:$0xff] %v1042_v38  ;;  %v1052_v13 = vld [vmem:[%s1485_s1 + $0xc0] sm:$0x3]  ;;  %v1057_v47 = vld [vmem:[%s1485_s1 + $0xc8] sm:$0x3]  ;;  %v109_v1 = vsub.f32 %v966_v7, %v1047_v37 }
  0x1c   :  { %1582 = vst [vmem:[#allocation45_spill] sm:$0xff] %v1047_v37  ;;  %1583 = vst [vmem:[#allocation46_spill] sm:$0xff] %v1052_v13  ;;  %v1070_v28 = vld [vmem:[%s1485_s1 + $0xd0] sm:$0x3]  ;;  %v1075_v23 = vld [vmem:[%s1485_s1 + $0xd8] sm:$0x3]  ;;  %v110_v48 = vsub.f32 %v971_v8, %v1052_v13  ;;  %v111_v2 = vsub.f32 %v976_v9, %v1057_v47  ;;  %v125_v9 = vmul.f32 %v881_v50, %v881_v50 }
  0x1d   :  { %1584 = vst [vmem:[#allocation47_spill] sm:$0xff] %v1057_v47  ;;  %1585 = vst [vmem:[#allocation48_spill] sm:$0xff] %v1070_v28  ;;  %v1080_v39 = vld [vmem:[%s1485_s1 + $0xe0] sm:$0x3]  ;;  %v1091_v11 = vld [vmem:[%s1484_s0 + $0xf0] sm:$0x3]  ;;  %v112_v13 = vsub.f32 %v1004_v56, %v1070_v28  ;;  %v113_v49 = vsub.f32 %v1009_v55, %v1075_v23  ;;  %v135_v55 = vmul.f32 %v103_v54, %v103_v54 }
  0x1e   :  { %1586 = vst [vmem:[#allocation49_spill] sm:$0xff] %v1075_v23  ;;  %1587 = vst [vmem:[#allocation50_spill] sm:$0xff] %v1080_v39  ;;  %v1096_v63 = vld [vmem:[%s1485_s1 + $0xe8] sm:$0x3]  ;;  %v1101_v37 = vld [vmem:[%s1485_s1 + $0xf0] sm:$0x3]  ;;  %v114_v47 = vsub.f32 %v1014_v0, %v1080_v39  ;;  %v126_v39 = vmul.f32 %v94_v57, %v94_v57  ;;  %v134_v0 = vmul.f32 %v102_v32, %v102_v32 }
  0x1f   :  { %1588 = vst [vmem:[#allocation51_spill] sm:$0xff] %v1091_v11  ;;  %1589 = vst [vmem:[#allocation52_spill] sm:$0xff] %v1096_v63  ;;  %v1114_v8 = vld [vmem:[%s1484_s0 + $0xf8] sm:$0x3]  ;;  %v115_v28 = vsub.f32 %v1042_v38, %v1096_v63  ;;  %v116_v23 = vsub.f32 %v1091_v11, %v1101_v37  ;;  %v136_v56 = vmul.f32 %v104_v46, %v104_v46  ;;  %v159_v45 = vsel %vm150_vm0, %v135_v55, 0.0 }
  0x20   :  { %1590 = vst [vmem:[#allocation53_spill] sm:$0xff] %v1101_v37  ;;  %1591 = vst [vmem:[#allocation54_spill] sm:$0xff] %v1114_v8  ;;  %v1119_v7 = vld [vmem:[%s1485_s1 + $0xf8] sm:$0x3]  ;;  %v131_v63 = vmul.f32 %v99_v5, %v99_v5  ;;  %v132_v38 = vmul.f32 %v100_v30, %v100_v30  ;;  %v138_v37 = vmul.f32 %v106_v24, %v106_v24  ;;  %v175_v58 = vsel %vm150_vm0, %v137_v62, 0.0 }
  0x21   :  { %1592 = vst [vmem:[#allocation55_spill] sm:$0xff] %v1119_v7  ;;  %v117_v50 = vsub.f32 %v1114_v8, %v1119_v7  ;;  %v139_v57 = vmul.f32 %v107_v15, %v107_v15  ;;  %v140_v32 = vmul.f32 %v108_v36, %v108_v36  ;;  %v141_v11 = vmul.f32 %v109_v1, %v109_v1 }
  0x22   :  { %v151_v7 = vsel %vm150_vm0, %v134_v0, 0.0  ;;  %v142_v54 = vmul.f32 %v110_v48, %v110_v48  ;;  %v167_v46 = vsel %vm150_vm0, %v136_v56, 0.0  ;;  %v143_v8 = vmul.f32 %v111_v2, %v111_v2 }
  0x23   :  { %v144_v59 = vmul.f32 %v112_v13, %v112_v13  ;;  %v145_v3 = vmul.f32 %v113_v49, %v113_v49  ;;  %v146_v4 = vmul.f32 %v114_v47, %v114_v47  ;;  %v147_v5 = vmul.f32 %v115_v28, %v115_v28 }
  0x24   :  { %v148_v30 = vmul.f32 %v116_v23, %v116_v23  ;;  %v149_v31 = vmul.f32 %v117_v50, %v117_v50  ;;  %v152_v15 = vadd.f32 %v151_v7, %v841_v40  ;;  %v160_v36 = vadd.f32 %v159_v45, %v923_v60 }
  0x25   :  { %v168_v0 = vadd.f32 %v167_v46, %v961_v6  ;;  %v176_v1 = vadd.f32 %v175_v58, %v999_v12  ;;  %v183_v55 = vsel %vm150_vm0, %v138_v37, 0.0  ;;  %v191_v56 = vsel %vm150_vm0, %v139_v57, 0.0 }
  0x26   :  { %v199_v62 = vsel %vm150_vm0, %v140_v32, 0.0  ;;  %v207_v2 = vsel %vm150_vm0, %v141_v11, 0.0  ;;  %v215_v28 = vsel %vm150_vm0, %v142_v54, 0.0  ;;  %v223_v23 = vsel %vm150_vm0, %v143_v8, 0.0 }
  0x27   :  { %v231_v40 = vsel %vm150_vm0, %v144_v59, 0.0  ;;  %v239_v60 = vsel %vm150_vm0, %v145_v3, 0.0  ;;  %v247_v6 = vsel %vm150_vm0, %v146_v4, 0.0  ;;  %v184_v12 = vadd.f32 %v183_v55, %v1037_v44 }
  0x28   :  { %v255_v37 = vsel %vm150_vm0, %v147_v5, 0.0  ;;  %v263_v7 = vsel %vm150_vm0, %v148_v30, 0.0  ;;  %v271_v13 = vsel %vm150_vm0, %v149_v31, 0.0  ;;  %v192_v11 = vadd.f32 %v191_v56, %v1065_v29 }
  0x29   :  { %v200_v24 = vadd.f32 %v199_v62, %v124_v18  ;;  %v208_v47 = vadd.f32 %v207_v2, %v125_v9  ;;  %v216_v48 = vadd.f32 %v215_v28, %v126_v39  ;;  %v224_v8 = vadd.f32 %v223_v23, %v127_v61 }
  0x2a   :  { %v232_v49 = vadd.f32 %v231_v40, %v128_v53  ;;  %v240_v50 = vadd.f32 %v239_v60, %v129_v52  ;;  %v248_v57 = vadd.f32 %v247_v6, %v130_v51  ;;  %v153_v32 = vrot.slane %v152_v15, 4 }
  0x2b   :  { %v256_v54 = vadd.f32 %v255_v37, %v131_v63  ;;  %v264_v45 = vadd.f32 %v263_v7, %v132_v38  ;;  %v272_v46 = vadd.f32 %v271_v13, %v133_v43  ;;  %v161_v44 = vrot.slane %v160_v36, 4 }
  0x2c   :  { %v169_v58 = vrot.slane %v168_v0, 4  ;;  %v177_v59 = vrot.slane %v176_v1, 4  ;;  %v185_v3 = vrot.slane %v184_v12, 4  ;;  %v193_v4 = vrot.slane %v192_v11, 4 }
  0x2d   :  { %v201_v5 = vrot.slane %v200_v24, 4  ;;  %v209_v30 = vrot.slane %v208_v47, 4  ;;  %v217_v31 = vrot.slane %v216_v48, 4  ;;  %v225_v29 = vrot.slane %v224_v8, 4 }
  0x2e   :  { %v233_v18 = vrot.slane %v232_v49, 4  ;;  %v241_v9 = vrot.slane %v240_v50, 4  ;;  %v249_v39 = vrot.slane %v248_v57, 4  ;;  %v154_v61 = vadd.f32 %v153_v32, %v152_v15 }
  0x2f   :  { %v257_v53 = vrot.slane %v256_v54, 4  ;;  %v265_v52 = vrot.slane %v264_v45, 4  ;;  %v273_v51 = vrot.slane %v272_v46, 4  ;;  %v162_v55 = vadd.f32 %v161_v44, %v160_v36 }
  0x30   :  { %v170_v63 = vadd.f32 %v169_v58, %v168_v0  ;;  %v178_v38 = vadd.f32 %v177_v59, %v176_v1  ;;  %v186_v43 = vadd.f32 %v185_v3, %v184_v12  ;;  %v194_v56 = vadd.f32 %v193_v4, %v192_v11 }
  0x31   :  { %v202_v62 = vadd.f32 %v201_v5, %v200_v24  ;;  %v210_v2 = vadd.f32 %v209_v30, %v208_v47  ;;  %v218_v28 = vadd.f32 %v217_v31, %v216_v48  ;;  %v226_v23 = vadd.f32 %v225_v29, %v224_v8 }
  0x32   :  { %v234_v40 = vadd.f32 %v233_v18, %v232_v49  ;;  %v242_v60 = vadd.f32 %v241_v9, %v240_v50  ;;  %v250_v6 = vadd.f32 %v249_v39, %v248_v57  ;;  %v155_v37 = vrot.slane %v154_v61, 2 }
  0x33   :  { %v258_v7 = vadd.f32 %v257_v53, %v256_v54  ;;  %v266_v13 = vadd.f32 %v265_v52, %v264_v45  ;;  %v274_v42 = vadd.f32 %v273_v51, %v272_v46  ;;  %v163_v15 = vrot.slane %v162_v55, 2 }
  0x34   :  { %v171_v32 = vrot.slane %v170_v63, 2  ;;  %v179_v41 = vrot.slane %v178_v38, 2  ;;  %v187_v35 = vrot.slane %v186_v43, 2  ;;  %v195_v36 = vrot.slane %v194_v56, 2 }
  0x35   :  { %v203_v0 = vrot.slane %v202_v62, 2  ;;  %v211_v1 = vrot.slane %v210_v2, 2  ;;  %v219_v12 = vrot.slane %v218_v28, 2  ;;  %v227_v11 = vrot.slane %v226_v23, 2 }
  0x36   :  { %v235_v24 = vrot.slane %v234_v40, 2  ;;  %v243_v47 = vrot.slane %v242_v60, 2  ;;  %v251_v48 = vrot.slane %v250_v6, 2  ;;  %v156_v8 = vadd.f32 %v155_v37, %v154_v61 }
  0x37   :  { %v259_v49 = vrot.slane %v258_v7, 2  ;;  %v267_v50 = vrot.slane %v266_v13, 2  ;;  %v275_v57 = vrot.slane %v274_v42, 2  ;;  %v164_v44 = vadd.f32 %v163_v15, %v162_v55 }
  0x38   :  { %v172_v54 = vadd.f32 %v171_v32, %v170_v63  ;;  %v180_v45 = vadd.f32 %v179_v41, %v178_v38  ;;  %v188_v46 = vadd.f32 %v187_v35, %v186_v43  ;;  %v196_v58 = vadd.f32 %v195_v36, %v194_v56 }
  0x39   :  { %v204_v59 = vadd.f32 %v203_v0, %v202_v62  ;;  %v212_v3 = vadd.f32 %v211_v1, %v210_v2  ;;  %v220_v4 = vadd.f32 %v219_v12, %v218_v28  ;;  %v228_v5 = vadd.f32 %v227_v11, %v226_v23 }
  0x3a   :  { %v236_v30 = vadd.f32 %v235_v24, %v234_v40  ;;  %v244_v31 = vadd.f32 %v243_v47, %v242_v60  ;;  %v252_v29 = vadd.f32 %v251_v48, %v250_v6  ;;  %v157_v18 = vrot.slane %v156_v8, 1 }
  0x3b   :  { %v260_v9 = vadd.f32 %v259_v49, %v258_v7  ;;  %v268_v39 = vadd.f32 %v267_v50, %v266_v13  ;;  %v276_v53 = vadd.f32 %v275_v57, %v274_v42  ;;  %v165_v61 = vrot.slane %v164_v44, 1 }
  0x3c   :  { %v173_v52 = vrot.slane %v172_v54, 1  ;;  %v181_v51 = vrot.slane %v180_v45, 1  ;;  %v189_v37 = vrot.slane %v188_v46, 1  ;;  %v197_v55 = vrot.slane %v196_v58, 1 }
  0x3d   :  { %v205_v63 = vrot.slane %v204_v59, 1  ;;  %v213_v41 = vrot.slane %v212_v3, 1  ;;  %v221_v35 = vrot.slane %v220_v4, 1  ;;  %v229_v38 = vrot.slane %v228_v5, 1 }
  0x3e   :  { %v237_v43 = vrot.slane %v236_v30, 1  ;;  %v245_v56 = vrot.slane %v244_v31, 1  ;;  %v253_v62 = vrot.slane %v252_v29, 1  ;;  %v1153_v2 = vadd.f32 %v157_v18, %v156_v8  ;;  %v1615_v18 = vld [vmem:[#allocation22_spill] sm:$0xff] }
  0x3f   :  { %v261_v28 = vrot.slane %v260_v9, 1  ;;  %v269_v23 = vrot.slane %v268_v39, 1  ;;  %v277_v40 = vrot.slane %v276_v53, 1  ;;  %v1155_v60 = vadd.f32 %v165_v61, %v164_v44 }
  0x40   :  { %1593 = vst [vmem:[#allocation56_spill] sm:$0xff] %v1153_v2  ;;  %v1157_v42 = vadd.f32 %v173_v52, %v172_v54  ;;  %v1159_v6 = vadd.f32 %v181_v51, %v180_v45  ;;  %v1161_v7 = vadd.f32 %v189_v37, %v188_v46  ;;  %v1163_v13 = vadd.f32 %v197_v55, %v196_v58  ;;  %v1618_v52 = vld [vmem:[#allocation28_spill] sm:$0xff]  ;;  %v1657_v2 = vld [vmem:[#allocation37_spill] sm:$0xff] }
  0x41   :  { %1594 = vst [vmem:[#allocation57_spill] sm:$0xff] %v1155_v60  ;;  %v1165_v15 = vadd.f32 %v205_v63, %v204_v59  ;;  %v1167_v32 = vadd.f32 %v213_v41, %v212_v3  ;;  %v1169_v36 = vadd.f32 %v221_v35, %v220_v4  ;;  %v1171_v1 = vadd.f32 %v229_v38, %v228_v5  ;;  %v1620_v37 = vld [vmem:[#allocation32_spill] sm:$0xff]  ;;  %v1622_v63 = vld [vmem:[#allocation33_spill] sm:$0xff]  ;;  %v1624_v35 = vld [vmem:[#allocation34_spill] sm:$0xff] }
  0x42   :  { %1595 = vst [vmem:[#allocation58_spill] sm:$0xff] %v1157_v42  ;;  %1596 = vst [vmem:[#allocation59_spill] sm:$0xff] %v1159_v6  ;;  %v1173_v12 = vadd.f32 %v237_v43, %v236_v30  ;;  %v1175_v11 = vadd.f32 %v245_v56, %v244_v31  ;;  %v1177_v24 = vadd.f32 %v253_v62, %v252_v29  ;;  %v1613_v30 = vld [vmem:[#allocation20_spill] sm:$0xff]  ;;  %v1626_v43 = vld [vmem:[#allocation38_spill] sm:$0xff] }
  0x43   :  { %1597 = vst [vmem:[#allocation60_spill] sm:$0xff] %v1161_v7  ;;  %1598 = vst [vmem:[#allocation61_spill] sm:$0xff] %v1163_v13  ;;  %v1179_v47 = vadd.f32 %v261_v28, %v260_v9  ;;  %v1181_v48 = vadd.f32 %v269_v23, %v268_v39  ;;  %v1183_v8 = vadd.f32 %v277_v40, %v276_v53  ;;  %v1616_v9 = vld [vmem:[#allocation26_spill] sm:$0xff]  ;;  %v1617_v53 = vld [vmem:[#allocation27_spill] sm:$0xff] }
  0x44   :  { %1599 = vst [vmem:[#allocation62_spill] sm:$0xff] %v1165_v15  ;;  %1600 = vst [vmem:[#allocation63_spill] sm:$0xff] %v1167_v32  ;;  %v1628_v62 = vld [vmem:[#allocation39_spill] sm:$0xff]  ;;  %v1630_v23 = vld [vmem:[#allocation40_spill] sm:$0xff] }
  0x45   :  { %1601 = vst [vmem:[#allocation64_spill] sm:$0xff] %v1169_v36  ;;  %1602 = vst [vmem:[#allocation65_spill] sm:$0xff] %v1171_v1  ;;  %v1649_v36 = vld [vmem:[#allocation23_spill] sm:$0xff]  ;;  %v1650_v32 = vld [vmem:[#allocation24_spill] sm:$0xff] }
  0x46   :  { %1603 = vst [vmem:[#allocation66_spill] sm:$0xff] %v1173_v12  ;;  %1604 = vst [vmem:[#allocation67_spill] sm:$0xff] %v1175_v11  ;;  %v1646_v11 = vld [vmem:[#allocation17_spill] sm:$0xff]  ;;  %v1653_v7 = vld [vmem:[#allocation30_spill] sm:$0xff] }
  0x47   :  { %1605 = vst [vmem:[#allocation68_spill] sm:$0xff] %v1177_v24  ;;  %1606 = vst [vmem:[#allocation69_spill] sm:$0xff] %v1179_v47  ;;  %v1651_v15 = vld [vmem:[#allocation25_spill] sm:$0xff]  ;;  %v1654_v6 = vld [vmem:[#allocation31_spill] sm:$0xff] }
  0x48   :  { %1607 = vst [vmem:[#allocation70_spill] sm:$0xff] %v1181_v48  ;;  %1608 = vst [vmem:[#allocation71_spill] sm:$0xff] %v1183_v8  ;;  %v1643_v8 = vld [vmem:[#allocation11_spill] sm:$0xff]  ;;  %v1644_v48 = vld [vmem:[#allocation12_spill] sm:$0xff] }
  0x49   :  { %v1652_v13 = vld [vmem:[#allocation29_spill] sm:$0xff]  ;;  %v1655_v42 = vld [vmem:[#allocation35_spill] sm:$0xff]  ;;  %v1656_v60 = vld [vmem:[#allocation36_spill] sm:$0xff] }
  0x81   :  { %v284_v0 = vpop.permute.xlu1 %283  ;;  %v289_v50 = vpop.permute.xlu0 %288 }
  0x82   :  { %v1186_v49 = vmul.f32 %v284_v0, %v720_v10  ;;  %v1189_v57 = vmul.f32 %v284_v0, %v732_v14  ;;  %v1192_v44 = vmul.f32 %v284_v0, %v739_v16  ;;  %v1195_v54 = vmul.f32 %v284_v0, %v744_v17 }
  0x83   :  { %v1198_v45 = vmul.f32 %v284_v0, %v754_v19  ;;  %v1201_v46 = vmul.f32 %v284_v0, %v759_v20  ;;  %v1204_v58 = vmul.f32 %v284_v0, %v764_v21  ;;  %v1207_v10 = vmul.f32 %v284_v0, %v769_v22  ;;  %v1609_v21 = vld [vmem:[#allocation10_spill] sm:$0xff] }
  0x84   :  { %v1210_v14 = vmul.f32 %v284_v0, %v781_v25  ;;  %v1213_v16 = vmul.f32 %v284_v0, %v786_v26  ;;  %v1216_v17 = vmul.f32 %v284_v0, %v791_v27  ;;  %v1219_v19 = vmul.f32 %v284_v0, %v812_v33  ;;  %v1610_v22 = vld [vmem:[#allocation14_spill] sm:$0xff]  ;;  %v1611_v25 = vld [vmem:[#allocation15_spill] sm:$0xff]  ;;  %v1612_v26 = vld [vmem:[#allocation16_spill] sm:$0xff] }
  0x85   :  { %v1222_v20 = vmul.f32 %v284_v0, %v817_v34  ;;  %v1225_v59 = vmul.f32 %v284_v0, %v1609_v21  ;;  %v1228_v3 = vmul.f32 %v284_v0, %v1610_v22  ;;  %v1231_v4 = vmul.f32 %v284_v0, %v1611_v25  ;;  %v328_v27 = vpop.permute.xlu1 %327  ;;  %v1614_v33 = vld [vmem:[#allocation21_spill] sm:$0xff]  ;;  %v1632_v0 = vld [vmem:[#allocation44_spill] sm:$0xff]  ;;  %v1634_v22 = vld [vmem:[#allocation51_spill] sm:$0xff] }
  0x86   :  { %v1234_v5 = vmul.f32 %v289_v50, %v1612_v26  ;;  %v308_v31 = vmul.f32 %v289_v50, %v1613_v30  ;;  %v309_v29 = vmul.f32 %v289_v50, %v1614_v33  ;;  %v310_v34 = vmul.f32 %v289_v50, %v1615_v18  ;;  %v1636_v26 = vld [vmem:[#allocation54_spill] sm:$0xff]  ;;  %v1638_v33 = vld [vmem:[#allocation3_spill] sm:$0xff] }
  0x87   :  { %v1240_v39 = vmul.f32 %v289_v50, %v1616_v9  ;;  %v1243_v61 = vmul.f32 %v289_v50, %v1617_v53  ;;  %v1246_v51 = vmul.f32 %v289_v50, %v1618_v52  ;;  %v1249_v55 = vmul.f32 %v289_v50, %v1620_v37  ;;  %v333_v9 = vpop.permute.xlu0 %332  ;;  %v1639_v53 = vld [vmem:[#allocation5_spill] sm:$0xff]  ;;  %v1640_v37 = vld [vmem:[#allocation6_spill] sm:$0xff] }
  0x88   :  { %v1252_v41 = vmul.f32 %v289_v50, %v1622_v63  ;;  %v1255_v38 = vmul.f32 %v289_v50, %v1624_v35  ;;  %v1258_v56 = vmul.f32 %v289_v50, %v1626_v43  ;;  %v1261_v28 = vmul.f32 %v289_v50, %v1628_v62  ;;  %v1641_v35 = vld [vmem:[#allocation7_spill] sm:$0xff]  ;;  %v1642_v62 = vld [vmem:[#allocation8_spill] sm:$0xff] }
  0x89   :  { %1619 = vst [vmem:[#allocation10_spill] sm:$0xff] %v1246_v51  ;;  %1621 = vst [vmem:[#allocation14_spill] sm:$0xff] %v1249_v55  ;;  %v1264_v40 = vmul.f32 %v289_v50, %v1630_v23  ;;  %v1267_v21 = vmul.f32 %v289_v50, %v1632_v0  ;;  %v1270_v25 = vmul.f32 %v289_v50, %v1634_v22  ;;  %v1645_v22 = vld [vmem:[#allocation13_spill] sm:$0xff]  ;;  %v1667_v55 = vld [vmem:[#allocation52_spill] sm:$0xff] }
  0x8a   :  { %1623 = vst [vmem:[#allocation15_spill] sm:$0xff] %v1252_v41  ;;  %1625 = vst [vmem:[#allocation16_spill] sm:$0xff] %v1255_v38  ;;  %v1273_v30 = vmul.f32 %v289_v50, %v1636_v26  ;;  %v335_v18 = vmul.f32 %v328_v27, %v1638_v33  ;;  %v336_v52 = vmul.f32 %v328_v27, %v1639_v53  ;;  %v1647_v26 = vld [vmem:[#allocation18_spill] sm:$0xff]  ;;  %v1648_v33 = vld [vmem:[#allocation19_spill] sm:$0xff] }
  0x8b   :  { %1627 = vst [vmem:[#allocation20_spill] sm:$0xff] %v1258_v56  ;;  %1629 = vst [vmem:[#allocation21_spill] sm:$0xff] %v1261_v28  ;;  %v337_v63 = vmul.f32 %v328_v27, %v1640_v37  ;;  %v338_v43 = vmul.f32 %v328_v27, %v1641_v35  ;;  %v339_v23 = vmul.f32 %v328_v27, %v1642_v62  ;;  %v1662_v28 = vld [vmem:[#allocation46_spill] sm:$0xff]  ;;  %v1663_v56 = vld [vmem:[#allocation47_spill] sm:$0xff] }
  0x8c   :  { %1631 = vst [vmem:[#allocation22_spill] sm:$0xff] %v1264_v40  ;;  %1633 = vst [vmem:[#allocation26_spill] sm:$0xff] %v1267_v21  ;;  %v340_v0 = vmul.f32 %v328_v27, %v1643_v8  ;;  %v341_v47 = vmul.f32 %v328_v27, %v1644_v48  ;;  %v342_v24 = vmul.f32 %v328_v27, %v1645_v22  ;;  %v1660_v21 = vld [vmem:[#allocation43_spill] sm:$0xff]  ;;  %v1661_v40 = vld [vmem:[#allocation45_spill] sm:$0xff] }
  0x8d   :  { %1635 = vst [vmem:[#allocation27_spill] sm:$0xff] %v1270_v25  ;;  %1637 = vst [vmem:[#allocation28_spill] sm:$0xff] %v1273_v30  ;;  %v343_v50 = vmul.f32 %v328_v27, %v1646_v11  ;;  %v344_v12 = vmul.f32 %v328_v27, %v1647_v26  ;;  %v345_v1 = vmul.f32 %v328_v27, %v1648_v33  ;;  %v1658_v30 = vld [vmem:[#allocation41_spill] sm:$0xff]  ;;  %v1659_v25 = vld [vmem:[#allocation42_spill] sm:$0xff] }
  0x8e   :  { %v346_v53 = vmul.f32 %v328_v27, %v1649_v36  ;;  %v347_v37 = vmul.f32 %v328_v27, %v1650_v32  ;;  %v348_v35 = vmul.f32 %v328_v27, %v1651_v15  ;;  %v349_v62 = vmul.f32 %v328_v27, %v1652_v13  ;;  %v1665_v38 = vld [vmem:[#allocation49_spill] sm:$0xff]  ;;  %v1666_v41 = vld [vmem:[#allocation50_spill] sm:$0xff] }
  0x8f   :  { %v350_v8 = vmul.f32 %v328_v27, %v1653_v7  ;;  %v351_v48 = vmul.f32 %v333_v9, %v1654_v6  ;;  %v352_v22 = vmul.f32 %v333_v9, %v1655_v42  ;;  %v353_v11 = vmul.f32 %v333_v9, %v1656_v60  ;;  %v1664_v27 = vld [vmem:[#allocation48_spill] sm:$0xff] }
  0x90   :  { %v354_v26 = vmul.f32 %v333_v9, %v1657_v2  ;;  %v355_v33 = vmul.f32 %v333_v9, %v1658_v30  ;;  %v356_v36 = vmul.f32 %v333_v9, %v1659_v25  ;;  %v357_v32 = vmul.f32 %v333_v9, %v1660_v21  ;;  %v1668_v30 = vld [vmem:[#allocation53_spill] sm:$0xff]  ;;  %v1670_v25 = vld [vmem:[#allocation55_spill] sm:$0xff] }
  0x91   :  { %v358_v15 = vmul.f32 %v333_v9, %v1661_v40  ;;  %v359_v13 = vmul.f32 %v333_v9, %v1662_v28  ;;  %v360_v7 = vmul.f32 %v333_v9, %v1663_v56  ;;  %v361_v6 = vmul.f32 %v333_v9, %v1664_v27 }
  0x92   :  { %v362_v42 = vmul.f32 %v333_v9, %v1665_v38  ;;  %v363_v60 = vmul.f32 %v333_v9, %v1666_v41  ;;  %v1305_v2 = vmul.f32 %v333_v9, %v1667_v55  ;;  %v1308_v51 = vmul.f32 %v333_v9, %v1668_v30 }
  0x93   :  { %v1311_v21 = vmul.f32 %v333_v9, %v1670_v25  ;;  %v367_v40 = vadd.f32 %v335_v18, %v1186_v49  ;;  %v368_v28 = vadd.f32 %v336_v52, %v1189_v57  ;;  %v369_v56 = vadd.f32 %v337_v63, %v1192_v44  ;;  %v1677_v18 = vld [vmem:[#allocation22_spill] sm:$0xff] }
  0x94   :  { %1669 = vst [vmem:[#allocation32_spill] sm:$0xff] %v1308_v51  ;;  %v370_v27 = vadd.f32 %v338_v43, %v1195_v54  ;;  %v371_v38 = vadd.f32 %v339_v23, %v1198_v45  ;;  %v372_v41 = vadd.f32 %v340_v0, %v1201_v46  ;;  %v373_v55 = vadd.f32 %v341_v47, %v1204_v58 }
  0x95   :  { %v374_v30 = vadd.f32 %v342_v24, %v1207_v10  ;;  %v1322_v51 = vadd.f32 %v343_v50, %v1210_v14  ;;  %v1325_v9 = vadd.f32 %v344_v12, %v1213_v16  ;;  %v1328_v49 = vadd.f32 %v345_v1, %v1216_v17  ;;  %v1671_v14 = vld [vmem:[#allocation10_spill] sm:$0xff] }
  0x96   :  { %v1331_v57 = vadd.f32 %v346_v53, %v1219_v19  ;;  %v1334_v44 = vadd.f32 %v347_v37, %v1222_v20  ;;  %v383_v54 = vadd.f32 %v351_v48, %v1234_v5  ;;  %v384_v47 = vadd.f32 %v352_v22, %v308_v31  ;;  %v1672_v17 = vld [vmem:[#allocation14_spill] sm:$0xff]  ;;  %v1673_v20 = vld [vmem:[#allocation15_spill] sm:$0xff]  ;;  %v1674_v31 = vld [vmem:[#allocation16_spill] sm:$0xff] }
  0x97   :  { %v385_v45 = vadd.f32 %v353_v11, %v309_v29  ;;  %v386_v24 = vadd.f32 %v354_v26, %v310_v34  ;;  %v1338_v46 = vadd.f32 %v348_v35, %v1225_v59  ;;  %v1341_v12 = vadd.f32 %v349_v62, %v1228_v3  ;;  %v1675_v29 = vld [vmem:[#allocation20_spill] sm:$0xff]  ;;  %v1676_v34 = vld [vmem:[#allocation21_spill] sm:$0xff] }
  0x98   :  { %v1344_v1 = vadd.f32 %v350_v8, %v1231_v4  ;;  %v387_v58 = vadd.f32 %v355_v33, %v1240_v39  ;;  %v388_v10 = vadd.f32 %v356_v36, %v1243_v61  ;;  %v389_v16 = vadd.f32 %v357_v32, %v1671_v14 }
  0x99   :  { %v390_v19 = vadd.f32 %v358_v15, %v1672_v17  ;;  %v1351_v5 = vadd.f32 %v359_v13, %v1673_v20  ;;  %v1354_v59 = vadd.f32 %v360_v7, %v1674_v31  ;;  %v1357_v3 = vadd.f32 %v361_v6, %v1675_v29 }
  0x9a   :  { %v1360_v4 = vadd.f32 %v362_v42, %v1676_v34  ;;  %v1363_v39 = vadd.f32 %v363_v60, %v1677_v18  ;;  %v399_v61 = vsel %vm150_vm0, %v383_v54, 0.0  ;;  %v407_v52 = vsel %vm150_vm0, %v384_v47, 0.0 }
  0x9b   :  { %v415_v63 = vsel %vm150_vm0, %v385_v45, 0.0  ;;  %v423_v43 = vsel %vm150_vm0, %v386_v24, 0.0  ;;  %v400_v23 = vadd.f32 %v399_v61, %v367_v40  ;;  %v408_v0 = vadd.f32 %v407_v52, %v368_v28 }
  0x9c   :  { %v416_v50 = vadd.f32 %v415_v63, %v369_v56  ;;  %v424_v53 = vadd.f32 %v423_v43, %v370_v27  ;;  %v431_v37 = vsel %vm150_vm0, %v387_v58, 0.0  ;;  %v439_v35 = vsel %vm150_vm0, %v388_v10, 0.0  ;;  %v1678_v43 = vld [vmem:[#allocation26_spill] sm:$0xff] }
  0x9d   :  { %v447_v62 = vsel %vm150_vm0, %v389_v16, 0.0  ;;  %v455_v8 = vsel %vm150_vm0, %v390_v19, 0.0  ;;  %v401_v48 = vrot.slane %v400_v23, 4  ;;  %v409_v22 = vrot.slane %v408_v0, 4 }
  0x9e   :  { %v417_v11 = vrot.slane %v416_v50, 4  ;;  %v425_v26 = vrot.slane %v424_v53, 4  ;;  %v432_v33 = vadd.f32 %v431_v37, %v371_v38  ;;  %v440_v36 = vadd.f32 %v439_v35, %v372_v41  ;;  %v1681_v37 = vld [vmem:[#allocation28_spill] sm:$0xff] }
  0x9f   :  { %v448_v32 = vadd.f32 %v447_v62, %v373_v55  ;;  %v456_v15 = vadd.f32 %v455_v8, %v374_v30  ;;  %v402_v13 = vadd.f32 %v401_v48, %v400_v23  ;;  %v410_v7 = vadd.f32 %v409_v22, %v408_v0  ;;  %v1679_v0 = vld [vmem:[#allocation27_spill] sm:$0xff] }
  0xa0   :  { %v418_v6 = vadd.f32 %v417_v11, %v416_v50  ;;  %v426_v42 = vadd.f32 %v425_v26, %v424_v53  ;;  %v433_v60 = vrot.slane %v432_v33, 4  ;;  %v441_v25 = vrot.slane %v440_v36, 4  ;;  %v1680_v50 = vld [vmem:[#allocation32_spill] sm:$0xff] }
  0xa1   :  { %v449_v40 = vrot.slane %v448_v32, 4  ;;  %v457_v28 = vrot.slane %v456_v15, 4  ;;  %v403_v56 = vrot.slane %v402_v13, 2  ;;  %v411_v27 = vrot.slane %v410_v7, 2 }
  0xa2   :  { %v419_v54 = vrot.slane %v418_v6, 2  ;;  %v427_v47 = vrot.slane %v426_v42, 2  ;;  %v434_v45 = vadd.f32 %v433_v60, %v432_v33  ;;  %v442_v24 = vadd.f32 %v441_v25, %v440_v36 }
  0xa3   :  { %v450_v58 = vadd.f32 %v449_v40, %v448_v32  ;;  %v458_v10 = vadd.f32 %v457_v28, %v456_v15  ;;  %v404_v38 = vadd.f32 %v403_v56, %v402_v13  ;;  %v412_v41 = vadd.f32 %v411_v27, %v410_v7 }
  0xa4   :  { %v420_v55 = vadd.f32 %v419_v54, %v418_v6  ;;  %v428_v30 = vadd.f32 %v427_v47, %v426_v42  ;;  %v435_v14 = vrot.slane %v434_v45, 2  ;;  %v443_v16 = vrot.slane %v442_v24, 2 }
  0xa5   :  { %v451_v17 = vrot.slane %v450_v58, 2  ;;  %v459_v19 = vrot.slane %v458_v10, 2  ;;  %v405_v20 = vrot.slane %v404_v38, 1  ;;  %v413_v31 = vrot.slane %v412_v41, 1 }
  0xa6   :  { %v421_v29 = vrot.slane %v420_v55, 1  ;;  %v429_v34 = vrot.slane %v428_v30, 1  ;;  %v436_v18 = vadd.f32 %v435_v14, %v434_v45  ;;  %v1373_v61 = vadd.f32 %v443_v16, %v442_v24 }
  0xa7   :  { %v1375_v52 = vadd.f32 %v451_v17, %v450_v58  ;;  %v1377_v63 = vadd.f32 %v459_v19, %v458_v10  ;;  %v396_v23 = vadd.f32 %v1305_v2, %v1678_v43  ;;  %v397_v53 = vadd.f32 %v1680_v50, %v1679_v0  ;;  %v531_v50 = vpop.permute.xlu0 %530 }
  0xa8   :  { %v398_v35 = vadd.f32 %v1311_v21, %v1681_v37  ;;  %v1385_v62 = vadd.f32 %v405_v20, %v404_v38  ;;  %v1387_v8 = vadd.f32 %v413_v31, %v412_v41  ;;  %v1389_v48 = vadd.f32 %v421_v29, %v420_v55 }
  0xa9   :  { %v1391_v22 = vadd.f32 %v429_v34, %v428_v30  ;;  %v437_v11 = vrot.slane %v436_v18, 1  ;;  %v463_v26 = vsel %vm150_vm0, %v1351_v5, 0.0  ;;  %v471_v2 = vsel %vm150_vm0, %v1354_v59, 0.0 }
  0xaa   :  { %v479_v33 = vsel %vm150_vm0, %v1357_v3, 0.0  ;;  %v487_v21 = vsel %vm150_vm0, %v1360_v4, 0.0  ;;  %v445_v32 = vrot.slane %v1373_v61, 1  ;;  %v453_v15 = vrot.slane %v1375_v52, 1 }
  0xab   :  { %v1401_v36 = vadd.f32 %v437_v11, %v436_v18  ;;  %v461_v13 = vrot.slane %v1377_v63, 1  ;;  %v464_v7 = vadd.f32 %v463_v26, %v1322_v51  ;;  %v472_v5 = vadd.f32 %v471_v2, %v1325_v9 }
  0xac   :  { %v480_v59 = vadd.f32 %v479_v33, %v1328_v49  ;;  %v488_v6 = vadd.f32 %v487_v21, %v1331_v57  ;;  %v495_v3 = vsel %vm150_vm0, %v1363_v39, 0.0  ;;  %v503_v4 = vsel %vm150_vm0, %v396_v23, 0.0 }
  0xad   :  { %v511_v42 = vsel %vm150_vm0, %v397_v53, 0.0  ;;  %v519_v60 = vsel %vm150_vm0, %v398_v35, 0.0  ;;  %v465_v25 = vrot.slane %v464_v7, 4  ;;  %v473_v40 = vrot.slane %v472_v5, 4 }
  0xae   :  { %v481_v28 = vrot.slane %v480_v59, 4  ;;  %v489_v56 = vrot.slane %v488_v6, 4  ;;  %v496_v51 = vadd.f32 %v495_v3, %v1334_v44  ;;  %v504_v9 = vadd.f32 %v503_v4, %v1338_v46 }
  0xaf   :  { %v512_v49 = vadd.f32 %v511_v42, %v1341_v12  ;;  %v520_v57 = vadd.f32 %v519_v60, %v1344_v1  ;;  %v466_v27 = vadd.f32 %v465_v25, %v464_v7  ;;  %v474_v39 = vadd.f32 %v473_v40, %v472_v5  ;;  %v1682_v60 = vld [vmem:[#allocation4_spill] sm:$0xff] }
  0xb0   :  { %v482_v54 = vadd.f32 %v481_v28, %v480_v59  ;;  %v490_v47 = vadd.f32 %v489_v56, %v488_v6  ;;  %v497_v45 = vrot.slane %v496_v51, 4  ;;  %v505_v24 = vrot.slane %v504_v9, 4 }
  0xb1   :  { %v513_v58 = vrot.slane %v512_v49, 4  ;;  %v521_v10 = vrot.slane %v520_v57, 4  ;;  %v467_v38 = vrot.slane %v466_v27, 2  ;;  %v475_v41 = vrot.slane %v474_v39, 2 }
  0xb2   :  { %v483_v55 = vrot.slane %v482_v54, 2  ;;  %v491_v30 = vrot.slane %v490_v47, 2  ;;  %v498_v14 = vadd.f32 %v497_v45, %v496_v51  ;;  %v506_v44 = vadd.f32 %v505_v24, %v504_v9 }
  0xb3   :  { %v514_v16 = vadd.f32 %v513_v58, %v512_v49  ;;  %v522_v46 = vadd.f32 %v521_v10, %v520_v57  ;;  %v468_v17 = vadd.f32 %v467_v38, %v466_v27  ;;  %v476_v12 = vadd.f32 %v475_v41, %v474_v39  ;;  %v1685_v38 = vld [vmem:[#allocation57_spill] sm:$0xff]  ;;  %v1687_v41 = vld [vmem:[#allocation59_spill] sm:$0xff] }
  0xb4   :  { %v484_v19 = vadd.f32 %v483_v55, %v482_v54  ;;  %v492_v1 = vadd.f32 %v491_v30, %v490_v47  ;;  %v499_v20 = vrot.slane %v498_v14, 2  ;;  %v507_v31 = vrot.slane %v506_v44, 2  ;;  %v1688_v30 = vld [vmem:[#allocation60_spill] sm:$0xff] }
  0xb5   :  { %v515_v29 = vrot.slane %v514_v16, 2  ;;  %v523_v34 = vrot.slane %v522_v46, 2  ;;  %v469_v18 = vrot.slane %v468_v17, 1  ;;  %v477_v43 = vrot.slane %v476_v12, 1 }
  0xb6   :  { %v485_v23 = vrot.slane %v484_v19, 1  ;;  %v493_v0 = vrot.slane %v492_v1, 1  ;;  %v500_v53 = vadd.f32 %v499_v20, %v498_v14  ;;  %v508_v37 = vadd.f32 %v507_v31, %v506_v44  ;;  %v1689_v44 = vld [vmem:[#allocation61_spill] sm:$0xff] }
  0xb7   :  { %v516_v35 = vadd.f32 %v515_v29, %v514_v16  ;;  %v524_v11 = vadd.f32 %v523_v34, %v522_v46  ;;  %v446_v26 = vadd.f32 %v445_v32, %v1373_v61  ;;  %v454_v2 = vadd.f32 %v453_v15, %v1375_v52  ;;  %v1690_v46 = vld [vmem:[#allocation62_spill] sm:$0xff]  ;;  %v1693_v31 = vld [vmem:[#allocation65_spill] sm:$0xff] }
  0xb8   :  { %v462_v33 = vadd.f32 %v461_v13, %v1377_v63  ;;  %v470_v21 = vadd.f32 %v469_v18, %v468_v17  ;;  %v501_v7 = vrot.slane %v500_v53, 1  ;;  %v509_v5 = vrot.slane %v508_v37, 1  ;;  %v1694_v34 = vld [vmem:[#allocation66_spill] sm:$0xff] }
  0xb9   :  { %v517_v59 = vrot.slane %v516_v35, 1  ;;  %v525_v6 = vrot.slane %v524_v11, 1  ;;  %v478_v3 = vadd.f32 %v477_v43, %v476_v12  ;;  %v486_v4 = vadd.f32 %v485_v23, %v484_v19  ;;  %v1691_v12 = vld [vmem:[#allocation63_spill] sm:$0xff] }
  0xba   :  { %v494_v42 = vadd.f32 %v493_v0, %v492_v1  ;;  %v1683_v25 = vsub.s32 0, %v1682_v60  ;;  %v502_v28 = vadd.f32 %v501_v7, %v500_v53  ;;  %v510_v56 = vadd.f32 %v509_v5, %v508_v37  ;;  %v1692_v1 = vld [vmem:[#allocation64_spill] sm:$0xff]  ;;  %v1695_v43 = vld [vmem:[#allocation67_spill] sm:$0xff]  ;;  %v1697_v53 = vld [vmem:[#allocation69_spill] sm:$0xff] }
  0xbb   :  { %v518_v51 = vadd.f32 %v517_v59, %v516_v35  ;;  %v526_v9 = vadd.f32 %v525_v6, %v524_v11  ;;  %v1696_v0 = vld [vmem:[#allocation68_spill] sm:$0xff]  ;;  %v1698_v35 = vld [vmem:[#allocation70_spill] sm:$0xff] }
  0xbc   :  { %v536_v40 = vrot.slane %v531_v50, %v1683_v25 }
  0xbe   :  { %v537_v61 = vadd.f32 %v536_v40, %v1385_v62  ;;  %v538_v52 = vadd.f32 %v536_v40, %v1387_v8  ;;  %v539_v63 = vadd.f32 %v536_v40, %v1389_v48  ;;  %v540_v32 = vadd.f32 %v536_v40, %v1391_v22  ;;  %v1684_v62 = vld [vmem:[#allocation56_spill] sm:$0xff]  ;;  %v1686_v22 = vld [vmem:[#allocation58_spill] sm:$0xff] }
  0xbf   :  { %v541_v15 = vadd.f32 %v536_v40, %v1401_v36  ;;  %v542_v13 = vadd.f32 %v536_v40, %v446_v26  ;;  %v543_v49 = vadd.f32 %v536_v40, %v454_v2  ;;  %v544_v57 = vadd.f32 %v536_v40, %v462_v33  ;;  %v1699_v26 = vld [vmem:[#allocation71_spill] sm:$0xff] }
  0xc0   :  { %v545_v27 = vadd.f32 %v536_v40, %v470_v21  ;;  %v546_v39 = vadd.f32 %v536_v40, %v478_v3  ;;  %v547_v54 = vadd.f32 %v536_v40, %v486_v4  ;;  %v548_v47 = vadd.f32 %v536_v40, %v494_v42  ;;  %v1700_v42 = vld [vmem:[#allocation9_spill] sm:$0xff] }
  0xc1   :  { %v549_v45 = vadd.f32 %v536_v40, %v502_v28  ;;  %v550_v24 = vadd.f32 %v536_v40, %v510_v56  ;;  %v551_v58 = vadd.f32 %v536_v40, %v518_v51  ;;  %v552_v10 = vadd.f32 %v536_v40, %v526_v9 }
  0xc2   :  { %v554_v8 = vsel %vm553_vm1, %v537_v61, %v1684_v62  ;;  %v555_v48 = vsel %vm553_vm1, %v538_v52, %v1685_v38  ;;  %v556_v36 = vsel %vm553_vm1, %v539_v63, %v1686_v22  ;;  %v557_v55 = vsel %vm553_vm1, %v540_v32, %v1687_v41 }
  0xc3   :  { %v558_v14 = vsel %vm553_vm1, %v541_v15, %v1688_v30  ;;  %v559_v16 = vsel %vm553_vm1, %v542_v13, %v1689_v44  ;;  %v560_v17 = vsel %vm553_vm1, %v543_v49, %v1690_v46  ;;  %v561_v19 = vsel %vm553_vm1, %v544_v57, %v1691_v12 }
  0xc4   :  { %v562_v20 = vsel %vm553_vm1, %v545_v27, %v1692_v1  ;;  %v563_v29 = vsel %vm553_vm1, %v546_v39, %v1693_v31  ;;  %v564_v18 = vsel %vm553_vm1, %v547_v54, %v1694_v34  ;;  %v565_v23 = vsel %vm553_vm1, %v548_v47, %v1695_v43 }
  0xc5   :  { %v566_v50 = vsel %vm553_vm1, %v549_v45, %v1696_v0  ;;  %v567_v37 = vsel %vm553_vm1, %v550_v24, %v1697_v53  ;;  %v568_v11 = vsel %vm553_vm1, %v551_v58, %v1698_v35  ;;  %v569_v2 = vsel %vm553_vm1, %v552_v10, %v1699_v26 }
  0xc6   :  { %v586_v33 = vcombine.low %v554_v8, %v555_v48  ;;  %v587_v21 = vcombine.low %v556_v36, %v557_v55  ;;  %v603_v7 = vcombine.low %v558_v14, %v559_v16  ;;  %v604_v5 = vcombine.low %v560_v17, %v561_v19 }
  0xc7   :  { %v620_v59 = vcombine.low %v562_v20, %v563_v29  ;;  %v621_v6 = vcombine.low %v564_v18, %v565_v23  ;;  %v637_v3 = vcombine.low %v566_v50, %v567_v37  ;;  %v638_v4 = vcombine.low %v568_v11, %v569_v2 }
  0xc8   :  { %v594_v60 = vrot.slane %v586_v33, %v1700_v42  ;;  %v601_v25 = vrot.slane %v587_v21, %v1700_v42  ;;  %v611_v40 = vrot.slane %v603_v7, %v1700_v42  ;;  %v618_v28 = vrot.slane %v604_v5, %v1700_v42 }
  0xc9   :  { %v628_v56 = vrot.slane %v620_v59, %v1700_v42  ;;  %v635_v51 = vrot.slane %v621_v6, %v1700_v42  ;;  %v645_v9 = vrot.slane %v637_v3, %v1700_v42  ;;  %v652_v61 = vrot.slane %v638_v4, %v1700_v42 }
  0xca   :  { %v602_v52 = vcombine.low %v594_v60, %v601_v25  ;;  %v619_v63 = vcombine.low %v611_v40, %v618_v28 }
  0xcb   :  { %v636_v32 = vcombine.low %v628_v56, %v635_v51  ;;  %v653_v15 = vcombine.low %v645_v9, %v652_v61 }
  0xcc   :  { %658 = vst [vmem:[%s1486_s5] sm:$0xff] %v602_v52  ;;  %659 = vst [vmem:[%s1486_s5 + $0x8] sm:$0xff] %v619_v63 }
  0xcd   :  { %660 = vst [vmem:[%s1486_s5 + $0x10] sm:$0xff] %v636_v32  ;;  %661 = vst [vmem:[%s1486_s5 + $0x18] sm:$0xff] %v653_v15 }

</bundles_post_ra>
